<compile_context>
chip_gen: v6e
topology: v6e:2x2x1
jax: 0.10.0
libtpu: 0.0.40
codegen_flags: <defaults>
</compile_context>

<pallas_src>
import math

import jax
import jax.numpy as jnp
from jax.experimental import pallas as pl
from jax.experimental.pallas import tpu as pltpu


# ----------------------------------------------------------------------------
# Kernel: one (tm, tn) output tile, accumulated over the K (Cin) grid axis.
# Grid axes are (j over Cout, i over B, k over Cin); k innermost ("arbitrary").
# ----------------------------------------------------------------------------
def _cps_fused_kernel(x_ref, xp_ref, w_ref, b_ref, q_ref, o_ref, acc_ref):
    """
    x_ref:  (tm, tk)   activation tile              (moves with i, k)
    xp_ref: (tm, 2r)   precomputed x @ P tile        (moves with i only)
    w_ref:  (tk, tn)   pre-transposed weight W^T     (moves with k, j)
    b_ref:  (1, tn)    effective bias, f32           (moves with j only)
    q_ref:  (2r, tn)   fused low-rank up-projection  (moves with j only)
    o_ref:  (tm, tn)   output tile                   (moves with i, j)
    acc_ref:(tm, tn)   f32 accumulator scratch
    """
    k = pl.program_id(2)

    @pl.when(k == 0)
    def _init():
        acc_ref[...] = jnp.zeros_like(acc_ref)

    # Base linear partial sum: x_k @ (W^T)_k   -> f32 accumulation on the MXU.
    acc_ref[...] += jnp.dot(x_ref[...], w_ref[...],
                            preferred_element_type=jnp.float32)

    @pl.when(k == pl.num_programs(2) - 1)
    def _finalize():
        acc = acc_ref[...]
        # Fused adapter + lora branches: xp @ Q   (K-independent -> once)
        acc = acc + jnp.dot(xp_ref[...], q_ref[...],
                            preferred_element_type=jnp.float32)
        acc = acc + b_ref[...].astype(jnp.float32)
        o_ref[...] = acc.astype(o_ref.dtype)


# ----------------------------------------------------------------------------
# Tile / VMEM budgeting helpers
# ----------------------------------------------------------------------------
def _ceil_to(n, m):
    return -(-n // m) * m


def _vmem_capacity_bytes():
    try:
        return int(pltpu.get_tpu_info().vmem_capacity_bytes)
    except Exception:
        return 64 << 20  # conservative (v7x per-TensorCore)


def _step_bytes(tm, tn, tk, r2, itemsize):
    """Approx VMEM footprint of one grid step (double-buffered blocks)."""
    lane = lambda n: _ceil_to(n, 128)
    sub = lambda n: _ceil_to(n, 8)
    blk = (sub(tm) * lane(tk)        # x tile
           + sub(tm) * lane(r2)      # xp tile
           + sub(tk) * lane(tn)      # W^T tile
           + sub(r2) * lane(tn)      # Q tile
           + sub(tm) * lane(tn))     # output tile
    bias = 8 * lane(tn) * 4          # effective bias (f32)
    acc = sub(tm) * lane(tn) * 4     # accumulator scratch (single buffer)
    return 2 * (blk * itemsize + bias) + acc


def _choose_tiles(batch, cout, cin, r2, itemsize, budget):
    """Largest (tm, tn, tk) that divide (B, Cout, Cin), keep lane-dense stores,
    respect the bf16 (16,128) min tile, and fit the VMEM budget.  K is split
    before shrinking tm/tn (keeps tiles MXU-friendly for large Cin)."""
    tn_cands = [c for c in (1024, 512, 256, 128) if cout % c == 0] or [cout]
    tm_cands = [c for c in (1024, 512, 256, 128, 64, 32, 16, 8) if batch % c == 0] or [batch]
    if itemsize < 4:  # sub-32-bit compute: bf16 min tile is (16, 128)
        tm_cands = [c for c in tm_cands if c >= 16] or [batch]
    tk_cands = [cin] + [c for c in (4096, 2048, 1024, 512, 256, 128)
                        if c < cin and cin % c == 0]
    for tm in tm_cands:
        for tn in tn_cands:
            for tk in tk_cands:
                if _step_bytes(tm, tn, tk, r2, itemsize) <= budget:
                    return tm, tn, tk
    return tm_cands[-1], tn_cands[-1], tk_cands[-1]


# ----------------------------------------------------------------------------
# Parameter precompute: run ONCE per parameter update (or memoize on weight
# identity), NOT per forward call.  All weight-only math lives here.
# ----------------------------------------------------------------------------
def prepare_cps_params(weight, bias, cps_right, cps_left, cps_right1, cps_left1,
                       cps_scaling=1.0, *, compute_dtype=None):
    """weight: (Cout, Cin) PyTorch convention.  Returns a dict of arrays:
       w_t     : (Cin, Cout)  pre-transposed base weight (compute dtype)
       p       : (Cin, 2r)    fused down-projection [W^T R | R1]
       q       : (2r, Cout)   fused up-projection   [s*relu(L); s*L1]
       bias_eff: (1, Cout)    b + (b @ R) @ s*relu(L)   (f32)
    """
    Cout, Cin = weight.shape
    r = cps_right.shape[1]
    s = float(cps_scaling) / float(r)
    f32 = jnp.float32

    w_t = weight.astype(f32).T                                   # (Cin, Cout)
    s_l = s * jnp.maximum(cps_left.astype(f32), 0.0)             # (r, Cout)
    s_l1 = s * cps_left1.astype(f32)                             # (r, Cout)
    p = jnp.concatenate([w_t @ cps_right.astype(f32),
                         cps_right1.astype(f32)], axis=1)        # (Cin, 2r)
    q = jnp.concatenate([s_l, s_l1], axis=0)                     # (2r, Cout)
    if bias is None:
        bias_eff = jnp.zeros((Cout,), f32)
    else:
        b32 = bias.astype(f32)
        bias_eff = b32 + (b32 @ cps_right.astype(f32)) @ s_l     # (Cout,)
    bias_eff = bias_eff.reshape(1, Cout)

    if compute_dtype is not None:
        w_t = w_t.astype(compute_dtype)
        p = p.astype(compute_dtype)
        q = q.astype(compute_dtype)
    return dict(w_t=w_t, p=p, q=q, bias_eff=bias_eff)


# ----------------------------------------------------------------------------
# Forward: per-call work only (tiny x@P GEMM + the fused kernel).
# ----------------------------------------------------------------------------
def linear_layer_cps_forward(x, params, *, tile_m=None, tile_n=None, tile_k=None):
    w_t, p, q, bias_eff = params["w_t"], params["p"], params["q"], params["bias_eff"]
    B, Cin = x.shape
    Cin_w, Cout = w_t.shape
    assert Cin == Cin_w, "x / weight Cin mismatch"
    r2 = p.shape[1]
    out_dtype = x.dtype
    cd = w_t.dtype                      # compute dtype chosen at prepare time
    itemsize = jnp.dtype(cd).itemsize

    xc = x.astype(cd)
    # Hoisted low-rank down-projection (M-tile-only dependence): tiny GEMM.
    xp = jnp.dot(xc, p, preferred_element_type=jnp.float32).astype(cd)  # (B, 2r)

    # Generation-aware tile budget: ~40% of physical VMEM for the blocks.
    vmem = _vmem_capacity_bytes()
    budget = min(56 << 20, (2 * vmem) // 5)
    tm, tn, tk = _choose_tiles(B, Cout, Cin, r2, itemsize, budget)
    if tile_m is not None:
        tm = tile_m
    if tile_n is not None:
        tn = tile_n
    if tile_k is not None:
        tk = tile_k
    assert B % tm == 0 and Cout % tn == 0 and Cin % tk == 0, \
        "tile sizes must divide (B, Cout, Cin)"

    # N outermost (weight streams once; v7x megacore shards N), K innermost.
    grid = (Cout // tn, B // tm, Cin // tk)

    est = _step_bytes(tm, tn, tk, r2, itemsize)
    cap = min(100 << 20, (3 * vmem) // 4)      # leave compiler scratch headroom
    vmem_limit = int(min(cap, max(est + (4 << 20), 16 << 20)))

    return pl.pallas_call(
        _cps_fused_kernel,
        out_shape=jax.ShapeDtypeStruct((B, Cout), out_dtype),
        grid_spec=pltpu.PrefetchScalarGridSpec(
            num_scalar_prefetch=0,
            grid=grid,
            in_specs=[
                pl.BlockSpec((tm, tk), lambda j, i, k: (i, k)),   # x tile
                pl.BlockSpec((tm, r2), lambda j, i, k: (i, 0)),   # xp (M only)
                pl.BlockSpec((tk, tn), lambda j, i, k: (k, j)),   # W^T tile
                pl.BlockSpec((1, tn), lambda j, i, k: (0, j)),    # effective bias
                pl.BlockSpec((r2, tn), lambda j, i, k: (0, j)),   # Q tile
            ],
            out_specs=pl.BlockSpec((tm, tn), lambda j, i, k: (i, j)),
            scratch_shapes=[pltpu.VMEM((tm, tn), jnp.float32)],
        ),
        compiler_params=pltpu.CompilerParams(
            dimension_semantics=("parallel", "parallel", "arbitrary"),
            vmem_limit_bytes=vmem_limit),
    )(xc, xp, w_t, bias_eff, q)


def linear_layer_cps(x, weight, bias, cps_right, cps_left, cps_right1, cps_left1,
                     cps_scaling=1.0, *, compute_dtype=None,
                     tile_m=None, tile_n=None, tile_k=None):
    """One-shot convenience wrapper (prepare + forward).  For real use, call
    prepare_cps_params once per parameter update and reuse the result."""
    params = prepare_cps_params(weight, bias, cps_right, cps_left, cps_right1,
                                cps_left1, cps_scaling, compute_dtype=compute_dtype)
    return linear_layer_cps_forward(x, params, tile_m=tile_m, tile_n=tile_n,
                                    tile_k=tile_k)


# ----------------------------------------------------------------------------
# Pure-JAX reference (mirrors the PyTorch forward exactly)
# ----------------------------------------------------------------------------
def _reference(x, weight, bias, r, l, r1, l1, cps_scaling):
    s = cps_scaling / r.shape[1]
    out = x @ weight.T + bias
    ada = (out @ r) @ jnp.maximum(l, 0.0) * s
    lora = (x @ r1) @ l1 * s
    return out + ada + lora


# TODO(synk): cps_dropout with p > 0 (stochastic training mode) is not
# implemented; the default p = 0 -> nn.Identity path is what the kernel fuses.

if __name__ == "__main__":
    # Small shapes consistent with the module: in_features=256, out_features=256,
    # cps_dim=8, batch=16.  Explicit tiles (tm=8, tn=128, tk=128) give a
    # (2, 2, 2) grid so the N/M index maps AND the K accumulator are exercised.
    B, Cin, Cout, cps_dim = 16, 256, 256, 8
    cps_scaling = 1.0

    key = jax.random.PRNGKey(0)
    k = jax.random.split(key, 7)
    x = jax.random.normal(k[0], (B, Cin), dtype=jnp.float32)
    weight = jax.random.normal(k[1], (Cout, Cin), dtype=jnp.float32) * 0.05
    bias = jax.random.normal(k[2], (Cout,), dtype=jnp.float32) * 0.1

    # reset_parameters(): kaiming_uniform on the "right" weights, zeros on the
    # "left" weights.  Perturb the left weights so the adapter / lora branches
    # are actually exercised.
    bound_r = math.sqrt(6.0 / ((1 + 5.0) * Cout))    # kaiming_uniform a=sqrt(5)
    bound_r1 = math.sqrt(6.0 / ((1 + 5.0) * Cin))
    cps_right = jax.random.uniform(k[3], (Cout, cps_dim), jnp.float32,
                                   minval=-bound_r, maxval=bound_r)
    cps_right1 = jax.random.uniform(k[4], (Cin, cps_dim), jnp.float32,
                                    minval=-bound_r1, maxval=bound_r1)
    cps_left = 0.05 * jax.random.normal(k[5], (cps_dim, Cout), jnp.float32)
    cps_left1 = 0.05 * jax.random.normal(k[6], (cps_dim, Cout), jnp.float32)

    y_ref = _reference(x, weight, bias, cps_right, cps_left,
                       cps_right1, cps_left1, cps_scaling)

    # --- f32 path: explicit small tiles -> (2,2,2) grid, tight tolerance -----
    params_f32 = prepare_cps_params(weight, bias, cps_right, cps_left,
                                    cps_right1, cps_left1, cps_scaling)
    y = linear_layer_cps_forward(x, params_f32, tile_m=8, tile_n=128, tile_k=128)
    y = jax.block_until_ready(y)
    assert y.shape == (B, Cout)
    assert jnp.allclose(y, y_ref, atol=2e-4, rtol=2e-4), "f32 mismatch vs reference"

    # --- bf16 fast path (v6e/v7x default), auto tiles, looser tolerance ------
    y_bf = linear_layer_cps(x, weight, bias, cps_right, cps_left,
                            cps_right1, cps_left1, cps_scaling,
                            compute_dtype=jnp.bfloat16)
    y_bf = jax.block_until_ready(y_bf)
    assert jnp.allclose(y_bf.astype(jnp.float32), y_ref, atol=5e-2, rtol=5e-2), \
        "bf16 mismatch vs reference"

    print("KERNEL_OK")
</pallas_src>

<mosaic_0001>
module attributes {stable_mosaic.version = 11 : i64} {
  func.func @_cps_fused_kernel(%arg0: i32, %arg1: i32, %arg2: i32, %arg3: memref<8x128xf32, #tpu.memory_space<vmem>>, %arg4: memref<8x16xf32, #tpu.memory_space<vmem>>, %arg5: memref<128x128xf32, #tpu.memory_space<vmem>>, %arg6: memref<1x128xf32, #tpu.memory_space<vmem>>, %arg7: memref<16x128xf32, #tpu.memory_space<vmem>>, %arg8: memref<8x128xf32, #tpu.memory_space<vmem>>, %arg9: memref<8x128xf32, #tpu.memory_space<vmem>>) attributes {dimension_semantics = [#tpu.dimension_semantics<parallel>, #tpu.dimension_semantics<parallel>, #tpu.dimension_semantics<arbitrary>], iteration_bounds = array<i64: 2, 2, 2>, scalar_prefetch = 0 : i64, scratch_operands = 1 : i64, tpu.core_type = #tpu.core_type<tc>, window_params = [{transform_indices = @transform_0, window_bounds = array<i64: 8, 128>}, {transform_indices = @transform_1, window_bounds = array<i64: 8, 16>}, {transform_indices = @transform_2, window_bounds = array<i64: 128, 128>}, {transform_indices = @transform_3, window_bounds = array<i64: 1, 128>}, {transform_indices = @transform_4, window_bounds = array<i64: 16, 128>}, {transform_indices = @transform_5, window_bounds = array<i64: 8, 128>}]} {
    %c0_i32 = arith.constant 0 : i32
    %0 = arith.cmpi eq, %arg2, %c0_i32 : i32
    %1 = arith.extui %0 : i1 to i32
    %c0_i32_0 = arith.constant 0 : i32
    %2 = arith.cmpi ne, %1, %c0_i32_0 : i32
    scf.if %2 {
      %cst_9 = arith.constant 0.000000e+00 : f32
      %12 = vector.broadcast %cst_9 : f32 to vector<8x128xf32>
      %c0_10 = arith.constant 0 : index
      %c0_11 = arith.constant 0 : index
      %13 = vector.load %arg9[%c0_10, %c0_11] : memref<8x128xf32, #tpu.memory_space<vmem>>, vector<8x128xf32>
      tpu.vector_store %arg9[%c0_10, %c0_11], %12 {strides = array<i32>} : memref<8x128xf32, #tpu.memory_space<vmem>>, vector<8x128xf32>,
    } else {
    }
    %c0 = arith.constant 0 : index
    %c0_1 = arith.constant 0 : index
    %3 = vector.load %arg9[%c0, %c0_1] : memref<8x128xf32, #tpu.memory_space<vmem>>, vector<8x128xf32>
    %c0_2 = arith.constant 0 : index
    %c0_3 = arith.constant 0 : index
    %4 = vector.load %arg3[%c0_2, %c0_3] : memref<8x128xf32, #tpu.memory_space<vmem>>, vector<8x128xf32>
    %c0_4 = arith.constant 0 : index
    %c0_5 = arith.constant 0 : index
    %5 = vector.load %arg5[%c0_4, %c0_5] : memref<128x128xf32, #tpu.memory_space<vmem>>, vector<128x128xf32>
    %cst = arith.constant dense<0.000000e+00> : vector<8x128xf32>
    %6 = tpu.matmul %4, %5, %cst {dimension_numbers = #tpu.dot_dimension_numbers<[1], [0], [0], [1], [0, 0, 1, 1], [], []>} : vector<8x128xf32>, vector<128x128xf32>, vector<8x128xf32> -> vector<8x128xf32>
    %7 = arith.addf %3, %6 : vector<8x128xf32>
    %c0_6 = arith.constant 0 : index
    %c0_7 = arith.constant 0 : index
    %8 = vector.load %arg9[%c0_6, %c0_7] : memref<8x128xf32, #tpu.memory_space<vmem>>, vector<8x128xf32>
    tpu.vector_store %arg9[%c0_6, %c0_7], %7 {strides = array<i32>} : memref<8x128xf32, #tpu.memory_space<vmem>>, vector<8x128xf32>,
    %c1_i32 = arith.constant 1 : i32
    %9 = arith.cmpi eq, %arg2, %c1_i32 : i32
    %10 = arith.extui %9 : i1 to i32
    %c0_i32_8 = arith.constant 0 : i32
    %11 = arith.cmpi ne, %10, %c0_i32_8 : i32
    scf.if %11 {
      %c0_9 = arith.constant 0 : index
      %c0_10 = arith.constant 0 : index
      %12 = vector.load %arg9[%c0_9, %c0_10] : memref<8x128xf32, #tpu.memory_space<vmem>>, vector<8x128xf32>
      %c0_11 = arith.constant 0 : index
      %c0_12 = arith.constant 0 : index
      %13 = vector.load %arg4[%c0_11, %c0_12] : memref<8x16xf32, #tpu.memory_space<vmem>>, vector<8x16xf32>
      %c0_13 = arith.constant 0 : index
      %c0_14 = arith.constant 0 : index
      %14 = vector.load %arg7[%c0_13, %c0_14] : memref<16x128xf32, #tpu.memory_space<vmem>>, vector<16x128xf32>
      %cst_15 = arith.constant dense<0.000000e+00> : vector<8x128xf32>
      %15 = tpu.matmul %13, %14, %cst_15 {dimension_numbers = #tpu.dot_dimension_numbers<[1], [0], [0], [1], [0, 0, 1, 1], [], []>} : vector<8x16xf32>, vector<16x128xf32>, vector<8x128xf32> -> vector<8x128xf32>
      %16 = arith.addf %12, %15 : vector<8x128xf32>
      %c0_16 = arith.constant 0 : index
      %c0_17 = arith.constant 0 : index
      %17 = vector.load %arg6[%c0_16, %c0_17] : memref<1x128xf32, #tpu.memory_space<vmem>>, vector<1x128xf32>
      %18 = vector.broadcast %17 : vector<1x128xf32> to vector<8x128xf32>
      %19 = arith.addf %16, %18 : vector<8x128xf32>
      %c0_18 = arith.constant 0 : index
      %c0_19 = arith.constant 0 : index
      %20 = vector.load %arg8[%c0_18, %c0_19] : memref<8x128xf32, #tpu.memory_space<vmem>>, vector<8x128xf32>
      tpu.vector_store %arg8[%c0_18, %c0_19], %19 {strides = array<i32>} : memref<8x128xf32, #tpu.memory_space<vmem>>, vector<8x128xf32>,
    } else {
    }
    return
  }
  func.func @transform_0(%arg0: i32, %arg1: i32, %arg2: i32) -> (i32, i32) {
    %c0_i32 = arith.constant 0 : i32
    return %arg1, %arg2 : i32, i32
  }
  func.func @transform_1(%arg0: i32, %arg1: i32, %arg2: i32) -> (i32, i32) {
    %c0_i32 = arith.constant 0 : i32
    %c0_i32_0 = arith.constant 0 : i32
    return %arg1, %c0_i32 : i32, i32
  }
  func.func @transform_2(%arg0: i32, %arg1: i32, %arg2: i32) -> (i32, i32) {
    %c0_i32 = arith.constant 0 : i32
    return %arg2, %arg0 : i32, i32
  }
  func.func @transform_3(%arg0: i32, %arg1: i32, %arg2: i32) -> (i32, i32) {
    %c0_i32 = arith.constant 0 : i32
    %c0_i32_0 = arith.constant 0 : i32
    return %c0_i32, %arg0 : i32, i32
  }
  func.func @transform_4(%arg0: i32, %arg1: i32, %arg2: i32) -> (i32, i32) {
    %c0_i32 = arith.constant 0 : i32
    %c0_i32_0 = arith.constant 0 : i32
    return %c0_i32, %arg0 : i32, i32
  }
  func.func @transform_5(%arg0: i32, %arg1: i32, %arg2: i32) -> (i32, i32) {
    %c0_i32 = arith.constant 0 : i32
    return %arg1, %arg0 : i32, i32
  }
}

</mosaic_0001>

<bundles_post_ra>
// kernel: tpu_custom_call.1
= control target key start
LH: loop header
LB: loop body
LE: loop exit
PB: predicated region body
PF: predicated region fallthrough
CT: control target
= control target key end

     0   :  { %s1954_s0 = inlined_call_operand.hbm [shape: f32[16,256], index: 0, kind: input, shape index: {}]   ;;  %s1955_s1 = inlined_call_operand.hbm [shape: f32[16,16], index: 1, kind: input, shape index: {}]   ;;  %s1956_s2 = inlined_call_operand.hbm [shape: f32[256,256], index: 2, kind: input, shape index: {}]   ;;  %s1957_s3 = inlined_call_operand.vmem [shape: f32[1,256], index: 3, kind: input, shape index: {}]   ;;  %s1958_s4 = inlined_call_operand.hbm [shape: f32[16,256], index: 4, kind: input, shape index: {}]   ;;  %s1959_s5 = inlined_call_operand.hbm [shape: f32[16,256], index: 5, kind: output, shape index: {}]  }
   0x1   :  { %1985 = sst [smem:[#allocation39_spill]] %s1954_s0 }
   0x2   :  { %1986 = sst [smem:[#allocation40_spill]] %s1955_s1 }
   0x3   :  { %1987 = sst [smem:[#allocation41_spill]] %s1957_s3 }
   0x4   :  { %1988 = sst [smem:[#allocation42_spill]] %s1958_s4 }
   0x5   :  { %1989 = sst [smem:[#allocation43_spill]] %s1959_s5 }
   0x6   :  { %10 = vsyncpa [#allocation4], 0 }
   0x7   :  { %12 = vsyncpa [#allocation4 + $0x1], 0 }
   0x8   :  { %13 = vsyncpa [#allocation7], 0 }
   0x9   :  { %15 = vsyncpa [#allocation7 + $0x1], 0 }
   0xa   :  { %16 = vsyncpa [#allocation10], 0 }
   0xb   :  { %18 = vsyncpa [#allocation10 + $0x1], 0 }
   0xc   :  { %19 = vsyncpa [#allocation5], 0 }
   0xd   :  { %21 = vsyncpa [#allocation5 + $0x1], 0  ;;  %s1451_s18 = smov 0   ;;  %s1453_s19 = smov 0  }
   0xe   :  { %s1455_s20 = smov 0   ;;  %s1457_s21 = smov 0  }
   0xf   :  { %s1459_s22 = smov 0   ;;  %s1461_s23 = smov 0  }
  0x10   :  { %s1463_s24 = smov 0   ;;  %s1465_s25 = smov 0  }
  0x11   :  { %s1467_s26 = smov 0   ;;  %s1469_s27 = smov 0  }
  0x12   :  { %s1471_s28 = smov 0   ;;  %s1473_s29 = smov 0  }
  0x13   :  { %s1475_s30 = smov 0   ;;  %s1477_s6 = smov 0  }
  0x14   :  { %s1479_s7 = smov 0   ;;  %s1481_s8 = smov 0  }
  0x15   :  { %s1483_s9 = smov 0   ;;  %s1485_s10 = smov 0  }
  0x16   :  { %s1487_s11 = smov 0   ;;  %s1489_s12 = smov 0  }
  0x17   :  { %s1491_s13 = smov 0   ;;  %s1493_s14 = smov 0  }
  0x18 LB: > { %1990 = sst [smem:[#allocation17_spill]] %s1322_s18  ;;  %s1560_s15 = sadd.s32 4294967295, %s1406_s14   ;;  %s1406_s14 = sphi %s1493_s14, %s27_s14   ;;  %s1402_s13 = sphi %s1491_s13, %s2086_s13   ;;  %s1398_s12 = sphi %s1489_s12, %s2085_s12   ;;  %s1394_s11 = sphi %s1487_s11, %s2073_s11   ;;  %s1390_s10 = sphi %s1485_s10, %s2084_s10   ;;  %s1386_s9 = sphi %s1483_s9, %s2072_s9   ;;  %s1382_s8 = sphi %s1481_s8, %s2083_s8   ;;  %s1378_s7 = sphi %s1479_s7, %s2070_s7   ;;  %s1374_s6 = sphi %s1477_s6, %s2082_s6   ;;  %s1370_s30 = sphi %s1475_s30, %s2081_s30   ;;  %s1366_s29 = sphi %s1473_s29, %s2068_s29   ;;  %s1362_s28 = sphi %s1471_s28, %s2067_s28   ;;  %s1358_s27 = sphi %s1469_s27, %s2066_s27   ;;  %s1354_s26 = sphi %s1467_s26, %s2080_s26   ;;  %s1350_s25 = sphi %s1465_s25, %s2079_s25   ;;  %s1346_s24 = sphi %s1463_s24, %s2078_s24   ;;  %s1342_s23 = sphi %s1461_s23, %s2077_s23   ;;  %s1338_s22 = sphi %s1459_s22, %s2075_s22   ;;  %s1334_s21 = sphi %s1457_s21, %s2064_s21   ;;  %s1330_s20 = sphi %s1455_s20, %s2063_s20   ;;  %s1326_s19 = sphi %s1453_s19, %s2062_s19   ;;  %s1322_s18 = sphi %s1451_s18, %s2061_s18  }
  0x19   : > { %1991 = sst [smem:[#allocation18_spill]] %s1326_s19  ;;  %p1970_p0 = scmp.eq.s32.totalorder %s1406_s14, 0 }
  0x1a   : > { %1992 = sst [smem:[#allocation19_spill]] %s1330_s20  ;;  %p1971_p1 = scmp.eq.s32.totalorder %s1560_s15, 0 }
  0x1b   : > { %1993 = sst [smem:[#allocation20_spill]] %s1334_s21  ;;  %p88_p2 = scmp.ne.s32.totalorder %s1366_s29, %s1362_s28 }
  0x1c   : > { %1994 = sst [smem:[#allocation21_spill]] %s1338_s22  ;;  %p94_p3 = scmp.ne.s32.totalorder %s1362_s28, %s1358_s27 }
  0x1d   : > { %1995 = sst [smem:[#allocation22_spill]] %s1362_s28  ;;  %p90_p5 = por %p88_p2, %p1970_p0 }
  0x1e   : > { %1996 = sst [smem:[#allocation23_spill]] %s1366_s29  ;;  %p1574_p6 = por %p94_p3, %p1971_p1 }
  0x1f   : > { %1997 = sst [smem:[#allocation24_spill]] %s1378_s7  ;;  %p1965_p7 = scmp.lt.s32.totalorder %s1406_s14, 8 }
  0x20   : > { %1998 = sst [smem:[#allocation25_spill]] %s1382_s8  ;;  %s248_s8 = sand.u32 1, %s1366_s29  }
  0x21   : > { %1999 = sst [smem:[#allocation26_spill]] %s1386_s9  ;;  %s246_s9 = sand.u32 1, %s1406_s14  }
  0x22   : > { %2000 = sst [smem:[#allocation27_spill]] %s1390_s10  ;;  %s775_s16 = sshll.u32 %s248_s8, 3 }
  0x23   : > { %2001 = sst [smem:[#allocation28_spill]] %s1394_s11  ;;  %s776_s3 = sshll.u32 %s1398_s12, 7 }
  0x24   : > { %2002 = sst [smem:[#allocation29_spill]] %s1398_s12  ;;  %s250_s21 = scalar_lea.vmem [#allocation6], %s775_s16 }
  0x25   : > { %s2003_s5 = scalar_select %p1574_p6, 1, 0 }
  0x26   : > { %s2005_s1 = sld [smem:[#allocation40_spill]]  ;;  %s257_s22 = sshll.u32 %s250_s21, 4  ;;  %s258_s22 = int_to_ptr.vmem [resolvable:$true] %s257_s22 }
  0x27   : > { %2004 = sst [smem:[#allocation30_spill]] %s2003_s5  ;;  %p1587_p8 = pnand %p1965_p7, %p90_p5 }
  0x28   : > { %p783_p9 = scmp.ge.s32.totalorder %s1406_s14, 1  ;;  %p311_p10 = scmp.lt.s32.totalorder %s1406_s14, 9 }
  0x29   : > { %s1593_s5 = scalar_lea.sflag [#allocation7], %s246_s9  ;;  %p1076_p11 = pneg %p1587_p8 }
  0x2a   : > { %s1087_s8 = scalar_lea.vmem %s258_s22, 128 }
  0x2b   : > { %p1088_p12 = scmp.ne.s32.totalorder %s258_s22, %s1087_s8 }
  0x2c   : > { %s255_s17 = scalar_lea.hbm %s2005_s1, %s776_s3  ;;  %s1408_s3 = smov [#allocation6]  }
  0x2d   : > { %p1090_p13 = pnand %p1088_p12, %p1076_p11  ;;  %s1092_s4 = sshll.u32 %s1408_s3, 4  ;;  %s1093_s4 = int_to_ptr.vmem [resolvable:$false] %s1092_s4 }
  0x2e   : > { %s1094_s21 = scalar_lea.vmem %s1093_s4, 256  ;;  %p1095_p3 = scmp.lt.s32.totalorder %s258_s22, %s1093_s4 }
  0x2f   : > { %p1091_p2 = pneg %p1090_p13  ;;  %p1096_p5 = scmp.lt.s32.totalorder %s1094_s21, %s1087_s8 }
  0x31   : > { %p1097_p7 = por %p1096_p5, %p1095_p3 }
  0x33   : > { %p1098_p4 = pnand %p1097_p7, %p1091_p2 }
  0x35   : > { %1101 = shalt.err (!%p1098_p4)
}
  0x36   : > { %877 = dma.hbm_to_vmem [thread:$0]  (!%p1587_p8), %s255_s17, 128, %s258_s22, %s1593_s5  }
  0x37   : > { %p1604_p4 = pnand %p783_p9, %p311_p10  ;;  %s39_s16 = sadd.s32 1, %s1394_s11 }
  0x38   : > { %p40_p7 = scmp.ge.s32.totalorder %s39_s16, 2  ;;  %s46_s27 = sadd.s32 1, %s1402_s13 }
  0x39   : > { %s55_s8 = sadd.s32 1, %s1378_s7  ;;  %p62_p11 = scmp.ne.s32.totalorder %s1378_s7, %s1374_s6 }
  0x3a   : > { %s2088_s16 = smov (%p40_p7, %s39_s16), 0  ;;  %s2009_s3 = sadd.s32 1, %s1398_s12 }
  0x3b   : > { %2008 = sst [smem:[#allocation31_spill]] %s2088_s16  ;;  %s2090_s3 = smov (!%p40_p7, %s2009_s3), %s1398_s12 }
  0x3c   : > { %s51_s22 = ssub.s32 %s1394_s11, %s2088_s16  ;;  %p1623_p8 = por %p1970_p0, %p62_p11 }
  0x3d   : > { %p44_p9 = scmp.ge.s32.totalorder %s2090_s3, 2  ;;  %p68_p10 = scmp.ne.s32.totalorder %s1374_s6, %s1370_s30 }
  0x3e   : > { %s109_s4 = sadd.s32 1, %s1354_s26  ;;  %p116_p12 = scmp.ne.s32.totalorder %s1354_s26, %s1350_s25 }
  0x3f   : > { %s2092_s3 = smov (%p44_p9, %s2090_s3), 0  ;;  %s2094_s27 = smov (!%p44_p9, %s46_s27), %s1402_s13 }
  0x40   : > { %2011 = sst [smem:[#allocation32_spill]] %s2092_s3  ;;  %s50_s21 = ssub.s32 %s1398_s12, %s2092_s3 }
  0x41   : > { %p1639_p13 = por %p1971_p1, %p68_p10  ;;  %p48_p2 = scmp.ge.s32.totalorder %s2094_s27, 2 }
  0x42   : > { %s52_s1 = sor.u32 %s51_s22, %s50_s21  ;;  %p79_p5 = scmp.eq.s32.totalorder %s50_s21, 0 }
  0x43   : > { %p53_p3 = scmp.eq.s32.totalorder %s52_s1, 0  ;;  %s2096_s27 = smov (%p48_p2, %s2094_s27), 0 }
  0x44   : > { %2013 = sst [smem:[#allocation33_spill]] %s2096_s27  ;;  %s2015_s3 = sadd.s32 1, %s1366_s29 }
  0x45   : > { %s1646_s30 = scalar_select %p53_p3, %s1378_s7, %s55_s8  }
  0x46   : > { %s1651_s16 = scalar_select %p79_p5, %s1366_s29, %s2015_s3  }
  0x47   : > { %2014 = sst [smem:[#allocation34_spill]] %s1646_s30  ;;  %s1655_s28 = ssub.s32 %s1402_s13, %s2096_s27 }
  0x48   : > { %2016 = sst [smem:[#allocation35_spill]] %s1651_s16  ;;  %p1662_p7 = por %p116_p12, %p1970_p0 }
  0x49   : > { %s106_s8 = sor.u32 %s1655_s28, %s51_s22  ;;  %p122_p11 = scmp.ne.s32.totalorder %s1350_s25, %s1346_s24 }
  0x4a   : > { %p107_p9 = scmp.eq.s32.totalorder %s106_s8, 0  ;;  %s186_s27 = sor.u32 %s1655_s28, %s50_s21 }
  0x4b   : > { %p1672_p2 = por %p122_p11, %p1971_p1  ;;  %p187_p3 = scmp.eq.s32.totalorder %s186_s27, 0 }
  0x4c   : > { %s1678_s30 = scalar_select %p107_p9, %s1354_s26, %s109_s4  }
  0x4d   : > { %s2018_s3 = scalar_select %p1672_p2, 1, 0 }
  0x4e   : > { %2020 = sst [smem:[#allocation37_spill]] %s1678_s30  ;;  %s189_s16 = sadd.s32 1, %s1330_s20 }
  0x4f   : > { %2019 = sst [smem:[#allocation36_spill]] %s2018_s3  ;;  %p199_p12 = scmp.ne.s32.totalorder %s1330_s20, %s1326_s19 }
  0x50   : > { %p205_p5 = scmp.ne.s32.totalorder %s1326_s19, %s1322_s18  ;;  %p2022_p0 = scmp.eq.s32.totalorder %s1560_s15, 7 }
  0x51   : > { %s1686_s24 = scalar_select %p187_p3, %s1330_s20, %s189_s16  }
  0x52   : > { %p1690_p11 = por %p2022_p0, %p199_p12  ;;  %s2024_s21 = sadd.s32 4294967294, %s1406_s14  }
  0x53   : > { %2021 = sst [smem:[#allocation38_spill]] %s1686_s24  ;;  %p206_p9 = scmp.eq.s32.totalorder %s2024_s21, 7 }
  0x54   : > { %s2023_s22 = scalar_select %p1690_p11, 1, 0 }
  0x55   : > { %s226_s4 = sand.u32 1, %s1378_s7   ;;  %s773_s27 = sshll.u32 %s1398_s12, 1 }
  0x56   : > { %p1698_p1 = por %p206_p9, %p205_p5  ;;  %s772_s29 = sshll.u32 %s226_s4, 3 }
  0x57   : > { %s235_s30 = sadd.s32 %s1394_s11, %s773_s27  ;;  %s2026_s0 = sld [smem:[#allocation39_spill]] }
  0x58   : > { %s2025_s8 = scalar_select %p1698_p1, 1, 0 }
  0x59   : > { %s774_s18 = sshll.u32 %s235_s30, 7  ;;  %s230_s20 = scalar_lea.vmem [#allocation3], %s772_s29 }
  0x5a   : > { %s239_s3 = sshll.u32 %s230_s20, 4  ;;  %p2027_p0 = scmp.lt.s32.totalorder %s1406_s14, 8  ;;  %s240_s3 = int_to_ptr.vmem [resolvable:$true] %s239_s3 }
  0x5b   : > { %s798_s12 = sshll.u32 %s1394_s11, 5  ;;  %s227_s19 = scalar_lea.sflag [#allocation4], %s226_s4 }
  0x5c   : > { %p1710_p3 = pnand %p2027_p0, %p1623_p8  ;;  %p2029_p12 = pmov %p2027_p0 }
  0x5d   : > { %s237_s24 = scalar_lea.hbm %s2026_s0, %s774_s18  ;;  %s274_s30 = sadd.s32 %s1402_s13, %s798_s12 }
  0x5e   : > { %p1719_p5 = pnand %p2029_p12, %p1662_p7  ;;  %p1104_p9 = pneg %p1710_p3 }
  0x5f   : > { %s1115_s18 = scalar_lea.vmem %s240_s3, 128  ;;  %s1409_s20 = smov [#allocation3]  }
  0x60   : > { %p1116_p10 = scmp.ne.s32.totalorder %s240_s3, %s1115_s18  ;;  %s1120_s29 = sshll.u32 %s1409_s20, 4  ;;  %s1121_s29 = int_to_ptr.vmem [resolvable:$false] %s1120_s29 }
  0x61   : > { %s1122_s17 = scalar_lea.vmem %s1121_s29, 256  ;;  %p1123_p8 = scmp.lt.s32.totalorder %s240_s3, %s1121_s29 }
  0x62   : > { %p1118_p1 = pnand %p1116_p10, %p1104_p9  ;;  %p1124_p0 = scmp.lt.s32.totalorder %s1122_s17, %s1115_s18 }
  0x64   : > { %p1119_p11 = pneg %p1118_p1  ;;  %p1125_p2 = por %p1124_p0, %p1123_p8 }
  0x66   : > { %p1126_p6 = pnand %p1125_p2, %p1119_p11 }
  0x68   : > { %1129 = shalt.err (!%p1126_p6)
}
  0x69   : > { %874 = dma.hbm_to_vmem [thread:$0]  (!%p1710_p3), %s237_s24, 128, %s240_s3, %s227_s19  }
  0x6a   : > { %s780_s12 = sshll.u32 %s274_s30, 7  ;;  %s266_s0 = sand.u32 1, %s1354_s26  }
  0x6b   : > { %s276_s16 = scalar_lea.hbm %s1956_s2, %s780_s12  ;;  %s777_s11 = sshll.u32 %s266_s0, 7 }
  0x6c   : > { %s268_s20 = scalar_lea.vmem [#allocation8], %s777_s11  ;;  %p1132_p1 = pneg %p1719_p5 }
  0x6d   : > { %s277_s7 = sshll.u32 %s268_s20, 4  ;;  %s1410_s21 = smov [#allocation8]   ;;  %s278_s7 = int_to_ptr.vmem [resolvable:$true] %s277_s7 }
  0x6e   : > { %s1143_s18 = scalar_lea.vmem %s278_s7, 2048  ;;  %s1148_s29 = sshll.u32 %s1410_s21, 4  ;;  %s1149_s29 = int_to_ptr.vmem [resolvable:$false] %s1148_s29 }
  0x6f   : > { %p1144_p7 = scmp.ne.s32.totalorder %s278_s7, %s1143_s18  ;;  %s1150_s3 = scalar_lea.vmem %s1149_s29, 4096 }
  0x70   : > { %p1151_p2 = scmp.lt.s32.totalorder %s278_s7, %s1149_s29  ;;  %p1152_p11 = scmp.lt.s32.totalorder %s1150_s3, %s1143_s18 }
  0x71   : > { %p1146_p6 = pnand %p1144_p7, %p1132_p1 }
  0x72   : > { %p1153_p3 = por %p1152_p11, %p1151_p2 }
  0x73   : > { %p1147_p10 = pneg %p1146_p6 }
  0x75   : > { %p1154_p12 = pnand %p1153_p3, %p1147_p10 }
  0x77   : > { %1157 = shalt.err (!%p1154_p12)
}
  0x78   : > { %s1411_s24 = smov 256   ;;  %s2031_s0 = sld [smem:[#allocation21_spill]] }
  0x79   : > { %s2032_s11 = sld [smem:[#allocation20_spill]]  ;;  %s1412_s30 = smov 128  }
  0x7a   : > { %s1413_s19 = smov 8   ;;  %s161_s17 = sadd.s32 1, %s1342_s23 }
  0x7b   : > { %880 = dma.hbm_to_vmem [thread:$0]  (!%p1719_p5), %s276_s16, 2048, %s278_s7, %s1593_s5, %s1411_s24, %s1412_s30, %s1413_s19  }
  0x7c   : > { %p2033_p9 = scmp.eq.s32.totalorder %s1655_s28, 0  ;;  %s293_s1 = sand.u32 1, %s1342_s23  }
  0x7d   : > { %s782_s4 = sshll.u32 %s1402_s13, 7  ;;  %p2034_p1 = scmp.eq.s32.totalorder %s1406_s14, 0 }
  0x7e   : > { %s1744_s12 = scalar_select %p2033_p9, %s1342_s23, %s161_s17  }
  0x7f   : > { %p168_p8 = scmp.ne.s32.totalorder %s1342_s23, %s2031_s0  ;;  %p174_p0 = scmp.ne.s32.totalorder %s2031_s0, %s2032_s11 }
  0x80   : > { %p2035_p6 = scmp.eq.s32.totalorder %s1560_s15, 0  ;;  %s781_s27 = sshll.u32 %s293_s1, 4 }
  0x81   : > { %p170_p7 = por %p168_p8, %p2034_p1  ;;  %s2037_s29 = sld [smem:[#allocation42_spill]] }
  0x82   : > { %p1756_p10 = por %p174_p0, %p2035_p6  ;;  %s297_s7 = scalar_lea.vmem [#allocation9], %s781_s27 }
  0x83   : > { %s303_s28 = sshll.u32 %s297_s7, 4  ;;  %p2038_p5 = scmp.lt.s32.totalorder %s1406_s14, 8  ;;  %s304_s28 = int_to_ptr.vmem [resolvable:$true] %s303_s28 }
  0x84   : > { %s294_s3 = scalar_lea.sflag [#allocation10], %s293_s1  ;;  %s1171_s0 = scalar_lea.vmem %s304_s28, 256 }
  0x85   : > { %p1765_p2 = pnand %p2038_p5, %p170_p7  ;;  %p1172_p3 = scmp.ne.s32.totalorder %s304_s28, %s1171_s0 }
  0x86   : > { %s1414_s11 = smov [#allocation9]  }
  0x87   : > { %s302_s5 = scalar_lea.hbm %s2037_s29, %s782_s4  ;;  %p1160_p11 = pneg %p1765_p2 }
  0x88   : > { %s1176_s17 = sshll.u32 %s1414_s11, 4  ;;  %s1177_s17 = int_to_ptr.vmem [resolvable:$false] %s1176_s17 }
  0x89   : > { %p1174_p12 = pnand %p1172_p3, %p1160_p11  ;;  %s1178_s4 = scalar_lea.vmem %s1177_s17, 512 }
  0x8a   : > { %p1179_p8 = scmp.lt.s32.totalorder %s304_s28, %s1177_s17  ;;  %p1180_p0 = scmp.lt.s32.totalorder %s1178_s4, %s1171_s0 }
  0x8b   : > { %p1175_p9 = pneg %p1174_p12 }
  0x8c   : > { %p1181_p1 = por %p1180_p0, %p1179_p8 }
  0x8e   : > { %p1182_p7 = pnand %p1181_p1, %p1175_p9 }
  0x90   : > { %1185 = shalt.err (!%p1182_p7)
}
  0x91   : > { %883 = dma.hbm_to_vmem [thread:$0]  (!%p1765_p2), %s302_s5, 256, %s304_s28, %s294_s3, %s1411_s24, %s1412_s30, %s1413_s19  }
  0x92   : > { %315 = sbr.rel (%p1604_p4) target bundleno = 659 (0x293), region = 40  ;;  %s317_s1 = sand.u32 (!%p1604_p4), 1, %s1374_s6  }
  0x93   : > { %s1779_s27 = sshll.u32 (!%p1604_p4), %s317_s1, 3  ;;  %s318_s18 = scalar_lea.sflag (!%p1604_p4), [#allocation4], %s317_s1 }
  0x94   : > { %s321_s21 = scalar_lea.vmem (!%p1604_p4), [#allocation3], %s1779_s27 }
  0x97   : > { %1301 = dma.done.wait (%p1639_p13), %s318_s18, 128  }
  0x98   : > { %1303 = vsyncadd (%p1639_p13), %s318_s18, 4294967168  ;;  %s2040_s29 = sld [smem:[#allocation22_spill]]  ;;  %s326_s24 = sand.u32 1, %s1560_s15  }
  0x99   : > { %s2041_s7 = sld [smem:[#allocation30_spill]]  ;;  %s327_s19 = scalar_lea.sflag [#allocation7], %s326_s24 }
  0x9e   : > { %s328_s30 = sand.u32 1, %s2040_s29  }
  0x9f   : > { %s1788_s9 = sshll.u32 %s328_s30, 3  ;;  %p2042_p4 = scmp.ne.s32.totalorder %s2041_s7, 0 }
  0xa0   : > { %s330_s5 = scalar_lea.vmem [#allocation6], %s1788_s9 }
  0xa1   : > { %1305 = dma.done.wait (%p2042_p4), %s327_s19, 128  }
  0xa2   : > { %1307 = vsyncadd (%p2042_p4), %s327_s19, 4294967168  ;;  %s2043_s28 = sld [smem:[#allocation36_spill]]  ;;  %s337_s16 = sand.u32 1, %s1350_s25  }
  0xa3   : > { %s786_s10 = sshll.u32 %s337_s16, 7 }
  0xa4   : > { %s1796_s3 = scalar_lea.vmem [#allocation8], %s786_s10 }
  0xa8   : > { %p2044_p13 = scmp.ne.s32.totalorder %s2043_s28, 0 }
  0xaa   : > { %1309 = dma.done.wait (%p2044_p13), %s327_s19, 2048  }
  0xab   : > { %1311 = vsyncadd (%p2044_p13), %s327_s19, 4294965248  ;;  %s2045_s15 = sld [smem:[#allocation21_spill]] }
  0xb1   : > { %s344_s0 = sand.u32 1, %s2045_s15  }
  0xb2   : > { %s1803_s11 = sshll.u32 %s344_s0, 4  ;;  %s345_s17 = scalar_lea.sflag [#allocation10], %s344_s0 }
  0xb3   : > { %s348_s4 = scalar_lea.vmem [#allocation9], %s1803_s11 }
  0xb4   : > { %1313 = dma.done.wait (%p1756_p10), %s345_s17, 256  }
  0xb5   : > { %1315 = vsyncadd (%p1756_p10), %s345_s17, 4294967040  ;;  %s2046_s1 = sld [smem:[#allocation18_spill]] }
  0xb6   : > { %s2047_s18 = sld [smem:[#allocation27_spill]] }
  0xb7   : > { %s2048_s19 = sld [smem:[#allocation41_spill]] }
  0xb8   : > { %s2049_s20 = sld [smem:[#allocation25_spill]] }
  0xbb   : > { %s390_s29 = sand.u32 1, %s2046_s1  }
  0xbc   : > { %p394_p6 = scmp.lt.s32.totalorder %s2047_s18, 1  ;;  %s1814_s7 = sshll.u32 %s390_s29, 3 }
  0xbd   : > { %s392_s16 = scalar_lea.vmem [#allocation11], %s1814_s7 }
  0xbe   : > { %s2098_s18 = smov (!%p394_p6, %s2047_s18), 1  ;;  %p789_p10 = scmp.ne.s32.totalorder %s2049_s20, 0 }
  0xbf   : > { %s396_s28 = scalar_lea.vmem %s2048_s19, %s2098_s18 }
  0xc0   : > { %400 = sbr.rel (%p789_p10) target bundleno = 199 (0xc7), region = 60 }
  0xc5   : > { %v1415_v0 = vmov 0.0  }
  0xc6   : > { %401 = vst [vmem:[#allocation2] sm:$0xff] %v1415_v0 }
  0xc7 PF: > { %v419_v1 = vld [vmem:[%s1796_s3 + $0x78] sm:$0xff]  ;;  %v1416_v2 = vmov 0.0   ;;  %v418_v3 = vld [vmem:[%s1796_s3 + $0x70] sm:$0xff]  ;;  %vm1417_vm0 = vmmov 0   ;;  %v417_v4 = vld [vmem:[%s1796_s3 + $0x68] sm:$0xff]  ;;  %s2050_s10 = sld [smem:[#allocation25_spill]] }
  0xc8   : > { %819 = vmatprep.subr.mxu0 %v1416_v2  ;;  %851 = vmatprep.mubr.msk.f32.mxu0 %vm1417_vm0, %v1416_v2  ;;  %v416_v5 = vld [vmem:[%s1796_s3 + $0x60] sm:$0xff]  ;;  %v415_v6 = vld [vmem:[%s1796_s3 + $0x58] sm:$0xff]  ;;  %v414_v7 = vld [vmem:[%s1796_s3 + $0x50] sm:$0xff] }
  0xc9   : > { %820 = vmatpush3.msra.mxu0 %v419_v1  ;;  %v413_v8 = vld [vmem:[%s1796_s3 + $0x48] sm:$0xff]  ;;  %v412_v9 = vld [vmem:[%s1796_s3 + $0x40] sm:$0xff]  ;;  %v411_v10 = vld [vmem:[%s1796_s3 + $0x38] sm:$0xff] }
  0xca   : > { %821 = vmatprep.subr.mxu0 %v1416_v2  ;;  %v410_v11 = vld [vmem:[%s1796_s3 + $0x30] sm:$0xff]  ;;  %v409_v12 = vld [vmem:[%s1796_s3 + $0x28] sm:$0xff]  ;;  %v408_v13 = vld [vmem:[%s1796_s3 + $0x20] sm:$0xff] }
  0xcb   : > { %822 = vmatpush3.msra.mxu0 %v418_v3  ;;  %v407_v14 = vld [vmem:[%s1796_s3 + $0x18] sm:$0xff]  ;;  %v406_v15 = vld [vmem:[%s1796_s3 + $0x10] sm:$0xff]  ;;  %v405_v16 = vld [vmem:[%s1796_s3 + $0x8] sm:$0xff] }
  0xcc   : > { %823 = vmatprep.subr.mxu0 %v1416_v2  ;;  %v404_v17 = vld [vmem:[%s1796_s3] sm:$0xff] }
  0xcd   : > { %824 = vmatpush3.msra.mxu0 %v417_v4  ;;  %v403_v18 = vld [vmem:[%s321_s21] sm:$0xff]  ;;  %v402_v19 = vld [vmem:[#allocation2] sm:$0xff]  ;;  %p790_p5 = scmp.ne.s32.totalorder %s2050_s10, 1 }
  0xce   : > { %825 = vmatprep.subr.mxu0 %v1416_v2 }
  0xcf   : > { %826 = vmatpush3.msra.mxu0 %v416_v5 }
  0xd0   : > { %827 = vmatprep.subr.mxu0 %v1416_v2 }
  0xd1   : > { %828 = vmatpush3.msra.mxu0 %v415_v6 }
  0xd2   : > { %829 = vmatprep.subr.mxu0 %v1416_v2 }
  0xd3   : > { %830 = vmatpush3.msra.mxu0 %v414_v7 }
  0xd4   : > { %831 = vmatprep.subr.mxu0 %v1416_v2 }
  0xd5   : > { %832 = vmatpush3.msra.mxu0 %v413_v8 }
  0xd6   : > { %833 = vmatprep.subr.mxu0 %v1416_v2 }
  0xd7   : > { %834 = vmatpush3.msra.mxu0 %v412_v9 }
  0xd8   : > { %835 = vmatprep.subr.mxu0 %v1416_v2 }
  0xd9   : > { %836 = vmatpush3.msra.mxu0 %v411_v10 }
  0xda   : > { %837 = vmatprep.subr.mxu0 %v1416_v2 }
  0xdb   : > { %838 = vmatpush3.msra.mxu0 %v410_v11 }
  0xdc   : > { %839 = vmatprep.subr.mxu0 %v1416_v2 }
  0xdd   : > { %840 = vmatpush3.msra.mxu0 %v409_v12 }
  0xde   : > { %841 = vmatprep.subr.mxu0 %v1416_v2 }
  0xdf   : > { %842 = vmatpush3.msra.mxu0 %v408_v13 }
  0xe0   : > { %843 = vmatprep.subr.mxu0 %v1416_v2 }
  0xe1   : > { %844 = vmatpush3.msra.mxu0 %v407_v14 }
  0xe2   : > { %845 = vmatprep.subr.mxu0 %v1416_v2 }
  0xe3   : > { %846 = vmatpush3.msra.mxu0 %v406_v15 }
  0xe4   : > { %847 = vmatprep.subr.mxu0 %v1416_v2 }
  0xe5   : > { %848 = vmatpush3.msra.mxu0 %v405_v16 }
  0xe6   : > { %849 = vmatprep.subr.mxu0 %v1416_v2 }
  0xe7   : > { %850 = vmatpush3.msra.mxu0 %v404_v17 }
  0xe8   : > { %852 = vmatmul.mubr.f32.vlgmr.msra.gmra.mxu0 %v403_v18 }
 0x1a7   : > { %495 = sbr.rel (%p790_p5) target bundleno = 631 (0x277), region = 64 }
 0x1a8   : > { %v486_v20 = vpop.f32.mrf.mxu0 }
 0x1a9   : > { %v490_v21 = vadd.f32 %v486_v20, %v402_v19 }
 0x1aa   : > { %v853_v22 = vpop.f32.mrf.mxu0 }
 0x1ab   : > { %491 = vst [vmem:[#allocation2] sm:$0xff] %v490_v21 }
 0x1ac   : > { %v499_v23 = vld [vmem:[%s348_s4 + $0x8] sm:$0xff]  ;;  %v1418_v24 = vmov 0.0   ;;  %v498_v25 = vld [vmem:[%s348_s4] sm:$0xff]  ;;  %vm1419_vm1 = vmmov 0   ;;  %vm500_vm2 = vcmask 130048  }
 0x1ad   : > { %854 = vmatprep.subr.mxu0 %v1418_v24  ;;  %858 = vmatprep.mubr.msk.f32.mxu0 %vm1419_vm1, %v1418_v24  ;;  %v497_v26 = vld [vmem:[%s330_s5] sm:$0xff] }
 0x1ae   : > { %855 = vmatpush3.msra.mxu0 %v499_v23  ;;  %v792_v29 = vld [vmem:[%s396_s28] ss:$0 sm:$0xff] }
 0x1af   : > { %856 = vmatprep.subr.mxu0 %v1418_v24 }
 0x1b0   : > { %857 = vmatpush3.msra.mxu0 %v498_v25 }
 0x1b1   : > { %859 = vmatmul.mubr.msk.f32.vlgmr.msra.gmra.mxu0 %vm500_vm2, %v497_v26 }
 0x1b2   : > { %v496_v27 = vld [vmem:[#allocation2] sm:$0xff] }
 0x271   : > { %v570_v28 = vpop.f32.mrf.mxu0 }
 0x272   : > { %v574_v30 = vadd.f32 %v570_v28, %v496_v27 }
 0x273   : > { %v860_v31 = vpop.f32.mrf.mxu0 }
 0x274   : > { %v582_v32 = vadd.f32 %v792_v29, %v574_v30 }
 0x276   : > { %583 = vst [vmem:[%s392_s16] sm:$0xff] %v582_v32 }
 0x277 PF: > { %s2052_s15 = sld [smem:[#allocation26_spill]]  ;;  %s600_s17 = sshll.u32 %s392_s16, 4  ;;  %s601_s17 = int_to_ptr.vmem [resolvable:$true] %s600_s17 }
 0x278   : > { %s2053_s9 = sld [smem:[#allocation27_spill]]  ;;  %s585_s19 = scalar_lea.sflag [#allocation5], %s390_s29 }
 0x279   : > { %s2055_s24 = sld [smem:[#allocation43_spill]]  ;;  %s1186_s28 = scalar_lea.vmem %s601_s17, 128 }
 0x27a   : > { %p1187_p2 = scmp.ne.s32.totalorder %s601_s17, %s1186_s28  ;;  %p2057_p11 = scmp.ne.s32.totalorder %s2023_s22, 0 }
 0x27b   : > { %s1420_s20 = smov [#allocation11]  }
 0x27c   : > { %p1188_p3 = pnand %p1187_p2, %p2057_p11  ;;  %s1190_s10 = sshll.u32 %s1420_s20, 4  ;;  %s1191_s10 = int_to_ptr.vmem [resolvable:$false] %s1190_s10 }
 0x27d   : > { %s794_s0 = sshll.u32 %s2052_s15, 1  ;;  %s1192_s27 = scalar_lea.vmem %s1191_s10, 256 }
 0x27e   : > { %s596_s11 = sadd.s32 %s2053_s9, %s794_s0  ;;  %p1189_p12 = pneg %p1188_p3 }
 0x27f   : > { %s795_s4 = sshll.u32 %s596_s11, 7  ;;  %s2056_s3 = smov %s2055_s24 }
 0x280   : > { %s598_s30 = scalar_lea.hbm %s2055_s24, %s795_s4  ;;  %p1193_p9 = scmp.lt.s32.totalorder %s601_s17, %s1191_s10 }
 0x281   : > { %p1194_p8 = scmp.lt.s32.totalorder %s1192_s27, %s1186_s28 }
 0x283   : > { %p1195_p0 = por %p1194_p8, %p1193_p9 }
 0x285   : > { %p1196_p1 = pnand %p1195_p0, %p1189_p12 }
 0x287   : > { %1199 = shalt.err (!%p1196_p1)
}
 0x288   : > { %s1200_s7 = scalar_lea.hbm %s598_s30, 128  ;;  %s1204_s21 = scalar_lea.hbm %s2056_s3, 512 }
 0x289   : > { %p1201_p7 = scmp.ne.s32.totalorder %s598_s30, %s1200_s7  ;;  %p1205_p6 = scmp.lt.s32.totalorder %s598_s30, %s2056_s3 }
 0x28a   : > { %p1206_p10 = scmp.lt.s32.totalorder %s1204_s21, %s1200_s7 }
 0x28b   : > { %p1202_p4 = pnand %p1201_p7, %p2057_p11 }
 0x28c   : > { %p1207_p5 = por %p1206_p10, %p1205_p6 }
 0x28d   : > { %p1203_p13 = pneg %p1202_p4 }
 0x28f   : > { %p1208_p2 = pnand %p1207_p5, %p1203_p13 }
 0x291   : > { %1211 = shalt.err (!%p1208_p2)
}
 0x292   : > { %869 = dma.vmem_to_hbm [thread:$0]  (%p2057_p11), %s601_s17, 128, %s598_s30, %s585_s19  }
 0x293 PF: > { %s2058_s5 = sld [smem:[#allocation17_spill]]  ;;  %p889_p3 = scmp.ge.s32.totalorder %s1406_s14, 2 }
 0x294   : > { %p2059_p12 = scmp.ne.s32.totalorder %s2025_s8, 0 }
 0x296   : > { %p885_p9 = pnand %p889_p3, %p2059_p12 }
 0x298   : > { %p886_p8 = pneg %p885_p9 }
 0x299   : > { %s612_s0 = sand.u32 1, %s2058_s5  }
 0x29a   : > { %s613_s11 = scalar_lea.sflag [#allocation5], %s612_s0 }
 0x29b   : > { %1317 = dma.done.wait (%p886_p8), %s613_s11, 128  }
 0x29c   : > { %1319 = vsyncadd (%p886_p8), %s613_s11, 4294967168  ;;  %s27_s14 = sadd.s32 1, %s1406_s14   ;;  %s2061_s18 = sld [smem:[#allocation18_spill]] }
 0x29d   : > { %p1883_p0 = scmp.ge.s32.totalorder %s27_s14, 10   ;;  %s2062_s19 = sld [smem:[#allocation19_spill]] }
 0x29e   : > { %s2063_s20 = sld [smem:[#allocation38_spill]]  ;;  %s2075_s22 = smov %s1342_s23 }
 0x29f   : > { %s2064_s21 = sld [smem:[#allocation21_spill]]  ;;  %s2077_s23 = smov %s1744_s12 }
 0x2a0   : > { %s2065_s8 = sld [smem:[#allocation37_spill]]  ;;  %s2078_s24 = smov %s1350_s25 }
 0x2a1   : > { %s2066_s27 = sld [smem:[#allocation22_spill]]  ;;  %s2079_s25 = smov %s1354_s26 }
 0x2a2   : > { %s2067_s28 = sld [smem:[#allocation23_spill]]  ;;  %s2081_s30 = smov %s1374_s6 }
 0x2a3   : > { %s2068_s29 = sld [smem:[#allocation35_spill]]  ;;  %s2084_s10 = smov %s1402_s13 }
 0x2a4   : > { %s2069_s17 = sld [smem:[#allocation24_spill]] }
 0x2a5   : > { %s2070_s7 = sld [smem:[#allocation34_spill]] }
 0x2a6   : > { %s2071_s1 = sld [smem:[#allocation28_spill]]  ;;  %s2080_s26 = smov %s2065_s8 }
 0x2a7   : > { %s2072_s9 = sld [smem:[#allocation29_spill]] }
 0x2a8   : > { %s2073_s11 = sld [smem:[#allocation31_spill]] }
 0x2a9   : > { %s2074_s16 = sld [smem:[#allocation32_spill]] }
 0x2aa   : > { %s2076_s15 = sld [smem:[#allocation33_spill]]  ;;  %s2082_s6 = smov %s2069_s17 }
 0x2ac   : > { %s2083_s8 = smov %s2071_s1  ;;  %26 = sbr.rel (!%p1883_p0) target bundleno = 24 (0x18), region = 133 }
 0x2af   : > { %s2085_s12 = smov %s2074_s16 }
 0x2b0   : > { %s2086_s13 = smov %s2076_s15 }
 0x2b1   :  { %618 = vsyncpa [#allocation4], 1 }
 0x2b2   :  { %620 = vsyncpa [#allocation4 + $0x1], 1 }
 0x2b3   :  { %621 = vsyncpa [#allocation7], 1 }
 0x2b4   :  { %623 = vsyncpa [#allocation7 + $0x1], 1 }
 0x2b5   :  { %624 = vsyncpa [#allocation10], 1 }
 0x2b6   :  { %626 = vsyncpa [#allocation10 + $0x1], 1 }
 0x2b7   :  { %627 = vsyncpa [#allocation5], 1 }
 0x2b8   :  { %629 = vsyncpa [#allocation5 + $0x1], 1 }

</bundles_post_ra>
